<compile_context>
chip_gen: v7x
topology: tpu7x:2x2x1
jax: 0.10.0
libtpu: 0.0.40
codegen_flags: <defaults>
</compile_context>

<pallas_src>
import math
from functools import partial

import jax
import jax.numpy as jnp
from jax.experimental import pallas as pl
from jax.experimental.pallas import tpu as pltpu


def _round_up(x, m):
    return (x + m - 1) // m * m


def _pick_tile_k(K):
    for c in (1024, 768, 512, 384, 256, 128):
        if K % c == 0:
            return c
    if K <= 1024:
        return K          # full-dim block (always legal)
    return 128            # generic fallback (requires padding); unused for this model


def _pick_tile_n(N):
    for c in (256, 128):  # prefer 256 -> >=2 N tiles at N>=512 for v7x megacore
        if N % c == 0:
            return c
    if N <= 512:
        return N          # full-dim block
    return 128


# ----------------------------------------------------------------------------
# GEMM (+ bias, optional fused residual add, optional ReLU) Pallas kernels
# ----------------------------------------------------------------------------
def _gemm_bias_kernel(x_ref, w_ref, b_ref, o_ref, acc_ref, *, relu):
    @pl.when(pl.program_id(2) == 0)
    def _():
        acc_ref[...] = jnp.zeros_like(acc_ref)

    acc_ref[...] += jnp.dot(x_ref[...], w_ref[...],
                            preferred_element_type=jnp.float32)

    @pl.when(pl.program_id(2) == pl.num_programs(2) - 1)
    def _():
        r = acc_ref[...] + b_ref[...]
        if relu:
            r = jnp.maximum(r, 0.0)
        o_ref[...] = r.astype(o_ref.dtype)


def _gemm_bias_res_kernel(x_ref, w_ref, b_ref, res_ref, o_ref, acc_ref, *, relu):
    @pl.when(pl.program_id(2) == 0)
    def _():
        acc_ref[...] = jnp.zeros_like(acc_ref)

    acc_ref[...] += jnp.dot(x_ref[...], w_ref[...],
                            preferred_element_type=jnp.float32)

    @pl.when(pl.program_id(2) == pl.num_programs(2) - 1)
    def _():
        r = acc_ref[...] + b_ref[...] + res_ref[...].astype(jnp.float32)
        if relu:
            r = jnp.maximum(r, 0.0)
        o_ref[...] = r.astype(o_ref.dtype)


@partial(jax.jit, static_argnames=("relu", "out_dtype"))
def matmul_bias(x, w, b, relu=False, res=None, out_dtype=jnp.bfloat16):
    """(M,K) @ (K,N) + b[N] (+ res) with optional fused ReLU.  bf16 in, f32 acc."""
    M, K = x.shape
    N = w.shape[1]
    xb = x.astype(jnp.bfloat16)
    wb = w.astype(jnp.bfloat16)
    bf = b.astype(jnp.float32).reshape(1, N)

    tm = 128 if M >= 128 else _round_up(M, 8)
    tk = _pick_tile_k(K)
    tn = _pick_tile_n(N)
    Mp, Kp, Np = _round_up(M, tm), _round_up(K, tk), _round_up(N, tn)

    if Mp != M or Kp != K:
        xb = jnp.pad(xb, ((0, Mp - M), (0, Kp - K)))
    if Kp != K or Np != N:
        wb = jnp.pad(wb, ((0, Kp - K), (0, Np - N)))
    if Np != N:
        bf = jnp.pad(bf, ((0, 0), (0, Np - N)))

    in_specs = [
        pl.BlockSpec((tm, tk), lambda i, j, k: (i, k)),
        pl.BlockSpec((tk, tn), lambda i, j, k: (k, j)),
        pl.BlockSpec((1, tn), lambda i, j, k: (0, j)),
    ]
    operands = [xb, wb, bf]
    if res is not None:
        rb = res.astype(jnp.bfloat16)
        if Mp != M or Np != N:
            rb = jnp.pad(rb, ((0, Mp - M), (0, Np - N)))
        in_specs.append(pl.BlockSpec((tm, tn), lambda i, j, k: (i, j)))
        operands.append(rb)
        kernel = partial(_gemm_bias_res_kernel, relu=relu)
    else:
        kernel = partial(_gemm_bias_kernel, relu=relu)

    out = pl.pallas_call(
        kernel,
        out_shape=jax.ShapeDtypeStruct((Mp, Np), out_dtype),
        grid_spec=pltpu.PrefetchScalarGridSpec(
            num_scalar_prefetch=0,
            grid=(Mp // tm, Np // tn, Kp // tk),
            in_specs=in_specs,
            out_specs=pl.BlockSpec((tm, tn), lambda i, j, k: (i, j)),
            scratch_shapes=[pltpu.VMEM((tm, tn), jnp.float32)],
        ),
        compiler_params=pltpu.CompilerParams(
            dimension_semantics=("parallel", "parallel", "arbitrary")),
    )(*operands)
    if Mp != M or Np != N:
        out = out[:M, :N]
    return out


# ----------------------------------------------------------------------------
# Convolutions (channels-last)
# ----------------------------------------------------------------------------
@partial(jax.jit, static_argnames=("relu",))
def conv1x1(x, w, b, relu=False, res=None):
    """1x1x1 conv on (B,D,H,W,C) = plain GEMM; optional fused residual + ReLU."""
    B, D, H, W, C = x.shape
    N = w.shape[1]
    r2 = None if res is None else res.reshape(B * D * H * W, N)
    out = matmul_bias(x.reshape(B * D * H * W, C), w, b, relu=relu, res=r2)
    return out.reshape(B, D, H, W, N)


@partial(jax.jit, static_argnames=("ksize", "stride", "padding", "relu"))
def conv_im2col(x, wmat, b, ksize, stride, padding, relu):
    """General conv via channels-last im2col + Pallas GEMM (stem + the 3 stride-2 convs)."""
    B, D, H, W, C = x.shape
    kd, kh, kw = ksize
    sd, sh, sw = stride
    pd, ph, pw = padding
    Do = (D + 2 * pd - kd) // sd + 1
    Ho = (H + 2 * ph - kh) // sh + 1
    Wo = (W + 2 * pw - kw) // sw + 1
    xp = jnp.pad(x, ((0, 0), (pd, pd), (ph, ph), (pw, pw), (0, 0)))
    taps = []
    for dz in range(kd):
        for dy in range(kh):
            for dx in range(kw):
                taps.append(xp[:, dz:dz + sd * Do:sd, dy:dy + sh * Ho:sh,
                               dx:dx + sw * Wo:sw, :])
    cols = jnp.stack(taps, axis=4).reshape(B * Do * Ho * Wo, kd * kh * kw * C)
    out = matmul_bias(cols, wmat, b, relu=relu)
    return out.reshape(B, Do, Ho, Wo, -1)


def _conv3x3x3_kernel(x_ref, w_ref, b_ref, o_ref, acc_ref, *, H, W):
    # x_ref: (1,1,H+2,W+2,C) slab at depth d+dz; w_ref: (1,3,3,C,Cout); grid axis 2 = dz.
    @pl.when(pl.program_id(2) == 0)
    def _():
        acc_ref[...] = jnp.zeros_like(acc_ref)

    for dy in range(3):
        for dx in range(3):
            patch = x_ref[0, 0, dy:dy + H, dx:dx + W, :]          # (H, W, C) from VMEM
            acc_ref[...] += jnp.dot(patch.reshape(H * W, patch.shape[-1]),
                                    w_ref[0, dy, dx, :, :],
                                    preferred_element_type=jnp.float32)

    @pl.when(pl.program_id(2) == pl.num_programs(2) - 1)
    def _():
        r = jnp.maximum(acc_ref[...] + b_ref[...], 0.0)   # BN(+bias) + ReLU always follow conv2
        o_ref[0, 0, :, :] = r.astype(o_ref.dtype)


@jax.jit
def conv3x3x3_s1(x, w5, b):
    """Direct stride-1 3x3x3 conv: no im2col in HBM; patches sliced in-kernel, kd on K-grid."""
    B, D, H, W, C = x.shape
    Cout = w5.shape[-1]
    xp = jnp.pad(x, ((0, 0), (1, 1), (1, 1), (1, 1), (0, 0)))
    Hp, Wp = H + 2, W + 2
    HW = H * W
    out = pl.pallas_call(
        partial(_conv3x3x3_kernel, H=H, W=W),
        out_shape=jax.ShapeDtypeStruct((B, D, HW, Cout), jnp.bfloat16),
        grid_spec=pltpu.PrefetchScalarGridSpec(
            num_scalar_prefetch=0,
            grid=(B, D, 3),
            in_specs=[
                pl.BlockSpec((1, 1, Hp, Wp, C),
                             lambda bi, di, zi: (bi, di + zi, 0, 0, 0)),
                pl.BlockSpec((1, 3, 3, C, Cout),
                             lambda bi, di, zi: (zi, 0, 0, 0, 0)),
                pl.BlockSpec((1, Cout), lambda bi, di, zi: (0, 0)),
            ],
            out_specs=pl.BlockSpec((1, 1, HW, Cout),
                                   lambda bi, di, zi: (bi, di, 0, 0)),
            scratch_shapes=[pltpu.VMEM((HW, Cout), jnp.float32)],
        ),
        compiler_params=pltpu.CompilerParams(
            dimension_semantics=("parallel", "parallel", "arbitrary")),
    )(xp, w5, b)
    return out.reshape(B, D, H, W, Cout)


# ----------------------------------------------------------------------------
# MaxPool3d(kernel=3, stride=2, padding=1) — separable, tiled lane-dense kernels
# ----------------------------------------------------------------------------
def _max3_kernel(a_ref, b_ref, c_ref, o_ref):
    o_ref[...] = jnp.maximum(jnp.maximum(a_ref[...], b_ref[...]), c_ref[...])


def _max3_rows(a, b, c):
    R, C = a.shape
    tr = 512 if R >= 512 else _round_up(R, 8)
    Rp = _round_up(R, tr)
    if Rp != R:
        pads = ((0, Rp - R), (0, 0))
        a, b, c = jnp.pad(a, pads), jnp.pad(b, pads), jnp.pad(c, pads)
    out = pl.pallas_call(
        _max3_kernel,
        out_shape=jax.ShapeDtypeStruct((Rp, C), a.dtype),
        grid_spec=pltpu.PrefetchScalarGridSpec(
            num_scalar_prefetch=0,
            grid=(Rp // tr,),
            in_specs=[pl.BlockSpec((tr, C), lambda i: (i, 0))] * 3,
            out_specs=pl.BlockSpec((tr, C), lambda i: (i, 0)),
        ),
        compiler_params=pltpu.CompilerParams(dimension_semantics=("parallel",)),
    )(a, b, c)
    return out[:R] if Rp != R else out


def _maxpool3_axis(x, axis):
    """Max over window 3, stride 2, pad 1 along one spatial axis of (B,D,H,W,C)."""
    L = x.shape[axis]
    Lo = (L - 1) // 2 + 1
    pads = [(0, 0)] * x.ndim
    pads[axis] = (1, 1)
    xp = jnp.pad(x, pads, constant_values=-jnp.inf)

    def tap(o):
        idx = [slice(None)] * x.ndim
        idx[axis] = slice(o, o + 2 * Lo - 1, 2)
        return xp[tuple(idx)]

    a, b, c = tap(0), tap(1), tap(2)
    shp = a.shape
    Cc = shp[-1]
    out = _max3_rows(a.reshape(-1, Cc), b.reshape(-1, Cc), c.reshape(-1, Cc))
    return out.reshape(shp)


@jax.jit
def maxpool3d(x):
    x = _maxpool3_axis(x, 3)   # W
    x = _maxpool3_axis(x, 2)   # H
    x = _maxpool3_axis(x, 1)   # D
    return x


# ----------------------------------------------------------------------------
# Global average pool: reduce (D*H*W) on the sublane axis, C (2048) on lanes
# ----------------------------------------------------------------------------
def _gap_kernel(x_ref, o_ref):
    o_ref[...] = jnp.mean(x_ref[...].astype(jnp.float32), axis=1, keepdims=True)


@jax.jit
def global_avg_pool(x):
    B, D, H, W, C = x.shape
    S = D * H * W
    xr = x.reshape(B, S, C)
    out = pl.pallas_call(
        _gap_kernel,
        out_shape=jax.ShapeDtypeStruct((B, 1, C), jnp.float32),
        grid_spec=pltpu.PrefetchScalarGridSpec(
            num_scalar_prefetch=0,
            grid=(B,),
            in_specs=[pl.BlockSpec((1, S, C), lambda i: (i, 0, 0))],
            out_specs=pl.BlockSpec((1, 1, C), lambda i: (i, 0, 0)),
        ),
        compiler_params=pltpu.CompilerParams(dimension_semantics=("parallel",)),
    )(xr)
    return out.reshape(B, C)


# ----------------------------------------------------------------------------
# Parameters (deterministic, synthetic) — ResNet-152 inflated to 3D
# Weights are pre-transposed / pre-reshaped / pre-cast to bf16 once, here.
# ----------------------------------------------------------------------------
LAYER_BLOCKS = (3, 8, 36, 3)        # ResNet-152
LAYER_WIDTHS = (64, 128, 256, 512)  # bottleneck width; expansion = 4
EXPANSION = 4


def make_params(key, out_channels):
    counter = [0]

    def nk():
        counter[0] += 1
        return jax.random.fold_in(key, counter[0])

    def conv_bn(cin, cout, kshape, layout):
        fan_in = cin * math.prod(kshape)
        w = jax.random.normal(nk(), (cout, cin) + kshape, jnp.float32) \
            * jnp.sqrt(2.0 / fan_in)
        # eval-mode BatchNorm (identity stats) folded into conv weight/bias
        gamma = jnp.ones((cout,), jnp.float32)
        beta = jnp.zeros((cout,), jnp.float32)
        mean = jnp.zeros((cout,), jnp.float32)
        var = jnp.ones((cout,), jnp.float32)
        scale = gamma / jnp.sqrt(var + 1e-5)
        w = w * scale[:, None, None, None, None]
        bias = (beta - mean * scale).reshape(1, cout)
        # (Cout,Cin,kd,kh,kw) -> (kd,kh,kw,Cin,Cout), bf16
        wt = jnp.transpose(w, (2, 3, 4, 1, 0)).astype(jnp.bfloat16)
        if layout == "gemm":
            wt = wt.reshape(math.prod(kshape) * cin, cout)
        return wt, bias

    params = {"stem": conv_bn(3, 64, (3, 7, 7), "gemm")}
    in_ch = 64
    layers = []
    for li, (width, nblocks) in enumerate(zip(LAYER_WIDTHS, LAYER_BLOCKS)):
        layer_stride = 1 if li == 0 else 2
        blocks = []
        for bi in range(nblocks):
            s = layer_stride if bi == 0 else 1
            blk = {
                "conv1": conv_bn(in_ch, width, (1, 1, 1), "gemm"),
                "conv2": conv_bn(width, width, (3, 3, 3),
                                 "direct" if s == 1 else "gemm"),
                "conv3": conv_bn(width, width * EXPANSION, (1, 1, 1), "gemm"),
                "stride": s,
            }
            if bi == 0:
                blk["downsample"] = conv_bn(in_ch, width * EXPANSION, (1, 1, 1), "gemm")
            in_ch = width * EXPANSION
            blocks.append(blk)
        layers.append(blocks)
    params["layers"] = layers

    # conv_class=True head: Conv3d(2048, out_channels, kernel=1) with bias
    wc = (jax.random.normal(nk(), (out_channels, 2048), jnp.float32)
          * jnp.sqrt(2.0 / 2048)).T.astype(jnp.bfloat16)
    bc = jnp.zeros((1, out_channels), jnp.float32)
    params["classifier"] = (wc, bc)
    return params


# ----------------------------------------------------------------------------
# Forward pass (I3ResNet.forward with conv_class=True, return_pool=False)
# ----------------------------------------------------------------------------
def image_classifier_forward(params, image):
    # single layout change at the input: NCDHW -> channels-last (B,D,H,W,C), bf16
    x = jnp.transpose(image, (0, 2, 3, 4, 1)).astype(jnp.bfloat16)

    # stem: inflated 7x7 conv -> (3,7,7), stride (1,2,2), pad (1,3,3), BN+ReLU fused
    w, b = params["stem"]
    x = conv_im2col(x, w, b, ksize=(3, 7, 7), stride=(1, 2, 2),
                    padding=(1, 3, 3), relu=True)
    x = maxpool3d(x)

    for blocks in params["layers"]:
        for blk in blocks:
            s = blk["stride"]
            if "downsample" in blk:
                xi = x[:, ::s, ::s, ::s, :] if s > 1 else x
                wd, bd = blk["downsample"]
                identity = conv1x1(xi, wd, bd, relu=False)
            else:
                identity = x

            w1, b1 = blk["conv1"]
            out = conv1x1(x, w1, b1, relu=True)

            w2, b2 = blk["conv2"]
            if s == 1:
                out = conv3x3x3_s1(out, w2, b2)                      # direct, no im2col
            else:
                out = conv_im2col(out, w2, b2, ksize=(3, 3, 3),
                                  stride=(s, s, s), padding=(1, 1, 1), relu=True)

            w3, b3 = blk["conv3"]
            # residual add + ReLU fused into the conv3 GEMM epilogue
            x = conv1x1(out, w3, b3, relu=True, res=identity)

    pooled = global_avg_pool(x)                       # (B, 2048) float32
    contrastive_features = pooled
    wc, bc = params["classifier"]
    ehr_features = matmul_bias(pooled, wc, bc, relu=False,
                               out_dtype=jnp.float32)  # (B, out_channels)
    return contrastive_features, ehr_features


if __name__ == "__main__":
    key = jax.random.PRNGKey(0)
    out_channels = 8
    params = make_params(jax.random.fold_in(key, 1), out_channels)

    # image: (B, C=3, D, H, W) in NCDHW, i.e. a small 3-channel volume
    image = jax.random.normal(jax.random.fold_in(key, 2), (2, 3, 8, 32, 32),
                              jnp.float32)

    contrastive_features, ehr_features = image_classifier_forward(params, image)
    jax.block_until_ready((contrastive_features, ehr_features))

    assert contrastive_features.shape == (2, 2048), contrastive_features.shape
    assert ehr_features.shape == (2, out_channels), ehr_features.shape
    assert bool(jnp.all(jnp.isfinite(contrastive_features)))
    assert bool(jnp.all(jnp.isfinite(ehr_features)))
    print("KERNEL_OK")
</pallas_src>

<mosaic_0001>
module attributes {stable_mosaic.version = 11 : i64} {
  func.func @_gemm_bias_kernel(%arg0: i32, %arg1: i32, %arg2: i32, %arg3: memref<128x441xbf16, #tpu.memory_space<vmem>>, %arg4: memref<441x64xbf16, #tpu.memory_space<vmem>>, %arg5: memref<1x64xf32, #tpu.memory_space<vmem>>, %arg6: memref<128x64xbf16, #tpu.memory_space<vmem>>, %arg7: memref<128x64xf32, #tpu.memory_space<vmem>>) attributes {dimension_semantics = [#tpu.dimension_semantics<parallel>, #tpu.dimension_semantics<parallel>, #tpu.dimension_semantics<arbitrary>], iteration_bounds = array<i64: 32, 1, 1>, scalar_prefetch = 0 : i64, scratch_operands = 1 : i64, tpu.core_type = #tpu.core_type<tc>, window_params = [{transform_indices = @transform_0, window_bounds = array<i64: 128, 441>}, {transform_indices = @transform_1, window_bounds = array<i64: 441, 64>}, {transform_indices = @transform_2, window_bounds = array<i64: 1, 64>}, {transform_indices = @transform_3, window_bounds = array<i64: 128, 64>}]} {
    %c0_i32 = arith.constant 0 : i32
    %0 = arith.cmpi eq, %arg2, %c0_i32 : i32
    %1 = arith.extui %0 : i1 to i32
    %c0_i32_0 = arith.constant 0 : i32
    %2 = arith.cmpi ne, %1, %c0_i32_0 : i32
    scf.if %2 {
      %cst_10 = arith.constant 0.000000e+00 : f32
      %12 = vector.broadcast %cst_10 : f32 to vector<128x64xf32>
      %c0_11 = arith.constant 0 : index
      %c0_12 = arith.constant 0 : index
      %13 = vector.load %arg7[%c0_11, %c0_12] : memref<128x64xf32, #tpu.memory_space<vmem>>, vector<128x64xf32>
      tpu.vector_store %arg7[%c0_11, %c0_12], %12 {strides = array<i32>} : memref<128x64xf32, #tpu.memory_space<vmem>>, vector<128x64xf32>,
    } else {
    }
    %c0 = arith.constant 0 : index
    %c0_1 = arith.constant 0 : index
    %3 = vector.load %arg7[%c0, %c0_1] : memref<128x64xf32, #tpu.memory_space<vmem>>, vector<128x64xf32>
    %c0_2 = arith.constant 0 : index
    %c0_3 = arith.constant 0 : index
    %4 = vector.load %arg3[%c0_2, %c0_3] : memref<128x441xbf16, #tpu.memory_space<vmem>>, vector<128x441xbf16>
    %c0_4 = arith.constant 0 : index
    %c0_5 = arith.constant 0 : index
    %5 = vector.load %arg4[%c0_4, %c0_5] : memref<441x64xbf16, #tpu.memory_space<vmem>>, vector<441x64xbf16>
    %cst = arith.constant dense<0.000000e+00> : vector<128x64xf32>
    %6 = tpu.matmul %4, %5, %cst {dimension_numbers = #tpu.dot_dimension_numbers<[1], [0], [0], [1], [0, 0, 1, 1], [], []>} : vector<128x441xbf16>, vector<441x64xbf16>, vector<128x64xf32> -> vector<128x64xf32>
    %7 = arith.addf %3, %6 : vector<128x64xf32>
    %c0_6 = arith.constant 0 : index
    %c0_7 = arith.constant 0 : index
    %8 = vector.load %arg7[%c0_6, %c0_7] : memref<128x64xf32, #tpu.memory_space<vmem>>, vector<128x64xf32>
    tpu.vector_store %arg7[%c0_6, %c0_7], %7 {strides = array<i32>} : memref<128x64xf32, #tpu.memory_space<vmem>>, vector<128x64xf32>,
    %c0_i32_8 = arith.constant 0 : i32
    %9 = arith.cmpi eq, %arg2, %c0_i32_8 : i32
    %10 = arith.extui %9 : i1 to i32
    %c0_i32_9 = arith.constant 0 : i32
    %11 = arith.cmpi ne, %10, %c0_i32_9 : i32
    scf.if %11 {
      %c0_10 = arith.constant 0 : index
      %c0_11 = arith.constant 0 : index
      %12 = vector.load %arg7[%c0_10, %c0_11] : memref<128x64xf32, #tpu.memory_space<vmem>>, vector<128x64xf32>
      %c0_12 = arith.constant 0 : index
      %c0_13 = arith.constant 0 : index
      %13 = vector.load %arg5[%c0_12, %c0_13] : memref<1x64xf32, #tpu.memory_space<vmem>>, vector<1x64xf32>
      %14 = vector.broadcast %13 : vector<1x64xf32> to vector<128x64xf32>
      %15 = arith.addf %12, %14 : vector<128x64xf32>
      %cst_14 = arith.constant 0.000000e+00 : f32
      %16 = vector.broadcast %cst_14 : f32 to vector<128x64xf32>
      %17 = arith.maximumf %15, %16 : vector<128x64xf32>
      %18 = arith.truncf %17 : vector<128x64xf32> to vector<128x64xbf16>
      %c0_15 = arith.constant 0 : index
      %c0_16 = arith.constant 0 : index
      %19 = vector.load %arg6[%c0_15, %c0_16] : memref<128x64xbf16, #tpu.memory_space<vmem>>, vector<128x64xbf16>
      tpu.vector_store %arg6[%c0_15, %c0_16], %18 {strides = array<i32>} : memref<128x64xbf16, #tpu.memory_space<vmem>>, vector<128x64xbf16>,
    } else {
    }
    return
  }
  func.func @transform_0(%arg0: i32, %arg1: i32, %arg2: i32) -> (i32, i32) {
    %c0_i32 = arith.constant 0 : i32
    return %arg0, %arg2 : i32, i32
  }
  func.func @transform_1(%arg0: i32, %arg1: i32, %arg2: i32) -> (i32, i32) {
    %c0_i32 = arith.constant 0 : i32
    return %arg2, %arg1 : i32, i32
  }
  func.func @transform_2(%arg0: i32, %arg1: i32, %arg2: i32) -> (i32, i32) {
    %c0_i32 = arith.constant 0 : i32
    %c0_i32_0 = arith.constant 0 : i32
    return %c0_i32, %arg1 : i32, i32
  }
  func.func @transform_3(%arg0: i32, %arg1: i32, %arg2: i32) -> (i32, i32) {
    %c0_i32 = arith.constant 0 : i32
    return %arg0, %arg1 : i32, i32
  }
}

</mosaic_0001>

<bundles_post_ra>
// kernel: matmul_bias.1
= control target key start
LH: loop header
LB: loop body
LE: loop exit
PB: predicated region body
PF: predicated region fallthrough
CT: control target
= control target key end

     0   :  { %s1578_s12 = smov 0   ;;  %s1580_s13 = smov 0   ;;  %s1901_s0 = inlined_call_operand.vmem [shape: bf16[4096,441], index: 0, kind: input, shape index: {}]   ;;  %s1902_s1 = inlined_call_operand.vmem [shape: bf16[441,64], index: 1, kind: input, shape index: {}]   ;;  %s1903_s2 = inlined_call_operand.vmem [shape: f32[1,64], index: 2, kind: input, shape index: {}]   ;;  %s1904_s3 = inlined_call_operand.vmem [shape: bf16[4096,64], index: 3, kind: output, shape index: {}]  }
   0x1   :  { %s1582_s14 = smov 0  }
   0x2 LB: > { %s32_s15 = sadd.s32 1, %s1549_s13  ;;  %p1230_p0 = scmp.ge.s32.totalorder %s1553_s14, 1  ;;  %s1553_s14 = sphi %s1582_s14, %s13_s14   ;;  %s1549_s13 = sphi %s1580_s13, %s1906_s13   ;;  %s1545_s12 = sphi %s1578_s12, %s1905_s12  }
   0x3   : > { %p34_p1 = scmp.ge.s32.totalorder %s32_s15, 32  ;;  %p191_p2 = scmp.lt.s32.totalorder %s1553_s14, 33 }
   0x5   : > { %s1908_s15 = smov (%p34_p1, %s32_s15), 0  ;;  %p192_p3 = pnand %p1230_p0, %p191_p2 }
   0x6   : > { %v1455_v0 = vld [vmem:[%s1902_s1 + $0x40] sm:$0xff] (!%p192_p3)   ;;  %v1555_v1 = vmov (!%p192_p3), 0   ;;  %v1458_v4 = vld [vmem:[%s1902_s1 + $0x48] sm:$0xff] (!%p192_p3)   ;;  %v1461_v7 = vld [vmem:[%s1902_s1 + $0x50] sm:$0xff] (!%p192_p3)   ;;  %s1231_s7 = sshll.u32 (!%p192_p3), %s1545_s12, 4  ;;  %vm712_vm0 = vcmask (!%p192_p3), 465920  }
   0x7   : > { %195 = sbr.rel (%p192_p3) target bundleno = 337 (0x151), region = 32  ;;  %1404 = vmatprep.subr.bf16.mxu1 (!%p192_p3), %v1555_v1  ;;  %v1605_v2 = vld [vmem:[%s1902_s1 + $0x80] sm:$0xff] (!%p192_p3)   ;;  %1340 = vmatprep.subr.bf16.mxu0 (!%p192_p3), %v1455_v0  ;;  %v1618_v5 = vld [vmem:[%s1902_s1 + $0x88] sm:$0xff] (!%p192_p3)   ;;  %v1630_v8 = vld [vmem:[%s1902_s1 + $0x90] sm:$0xff] (!%p192_p3)   ;;  %p236_p4 = scmp.lt.s32.totalorder (!%p192_p3), %s1231_s7, 511  ;;  %vm737_vm1 = vcmask (!%p192_p3), 1043456  }
   0x8   : > { %v1457_v3 = vld [vmem:[%s1902_s1] sm:$0xff] (!%p192_p3)   ;;  %1416 = vmatpush1.bf16.msra.mxu1 (!%p192_p3), %v1605_v2  ;;  %v1460_v6 = vld [vmem:[%s1902_s1 + $0x8] sm:$0xff] (!%p192_p3)   ;;  %v1463_v9 = vld [vmem:[%s1902_s1 + $0x10] sm:$0xff] (!%p192_p3)   ;;  %vm738_vm2 = vcmask (!%p192_p3), 1044480   ;;  %v1556_v31 = vmov (!%p192_p3), 65535   ;;  %vm272_vm3 = vcmask (!%p192_p3), 523264  }
   0x9   : > { %1341 = vmatpush3.bf16.msra.mxu0 (!%p192_p3), %v1457_v3  ;;  %1405 = vmatprep.subr.bf16.mxu1 (!%p192_p3), %v1555_v1  ;;  %v1464_v10 = vld [vmem:[%s1902_s1 + $0x58] sm:$0xff] (!%p192_p3)   ;;  %v1467_v13 = vld [vmem:[%s1902_s1 + $0x60] sm:$0xff] (!%p192_p3)   ;;  %v1470_v16 = vld [vmem:[%s1902_s1 + $0x68] sm:$0xff] (!%p192_p3)   ;;  %v739_v32 = vsel (!%p192_p3), %vm737_vm1, 4294967295, %v1556_v31  ;;  %vm1093_vm4 = vcmask (!%p192_p3), 519168  }
   0xa   : > { %1342 = vmatprep.subr.bf16.mxu0 (!%p192_p3), %v1458_v4  ;;  %v1644_v11 = vld [vmem:[%s1902_s1 + $0x98] sm:$0xff] (!%p192_p3)   ;;  %v1657_v14 = vld [vmem:[%s1902_s1 + $0xa0] sm:$0xff] (!%p192_p3)   ;;  %v1672_v17 = vld [vmem:[%s1902_s1 + $0xa8] sm:$0xff] (!%p192_p3)   ;;  %v740_v36 = vsel (!%p192_p3), %vm738_vm2, %v739_v32, 0 }
   0xb   : > { %v1466_v12 = vld [vmem:[%s1902_s1 + $0x18] sm:$0xff] (!%p192_p3)   ;;  %v1469_v15 = vld [vmem:[%s1902_s1 + $0x20] sm:$0xff] (!%p192_p3)   ;;  %v1472_v18 = vld [vmem:[%s1902_s1 + $0x28] sm:$0xff] (!%p192_p3)  }
   0xc   : > { %1417 = vmatpush1.bf16.msra.mxu1 (!%p192_p3), %v1618_v5  ;;  %v1473_v19 = vld [vmem:[%s1902_s1 + $0x70] sm:$0xff] (!%p192_p3)   ;;  %v1476_v22 = vld [vmem:[%s1902_s1 + $0x78] sm:$0xff] (!%p192_p3)   ;;  %v1716_v27 = vld [vmem:[%s1902_s1 + $0xc0] sm:$0xff] (!%p192_p3)  }
   0xd   : > { %1343 = vmatpush3.bf16.msra.mxu0 (!%p192_p3), %v1460_v6  ;;  %1406 = vmatprep.subr.bf16.mxu1 (!%p192_p3), %v1555_v1  ;;  %v1685_v20 = vld [vmem:[%s1902_s1 + $0xb0] sm:$0xff] (!%p192_p3)   ;;  %v1705_v24 = vld [vmem:[%s1902_s1 + $0xb8] sm:$0xff] (!%p192_p3)   ;;  %v1727_v30 = vld [vmem:[%s1902_s1 + $0xc8] sm:$0xff] (!%p192_p3)  }
   0xe   : > { %1344 = vmatprep.subr.bf16.mxu0 %v1461_v7  ;;  %s1910_s7 = smov (!%p236_p4, %s1231_s7), 511  ;;  %v1475_v21 = vld [vmem:[%s1902_s1 + $0x30] sm:$0xff]   ;;  %v1478_v25 = vld [vmem:[%s1902_s1 + $0x38] sm:$0xff]  }
   0xf   : > { %s1323_s27 = sshll.u32 %s1910_s7, 4  ;;  %v1487_v34 = vld [vmem:[%s1902_s1 + $0xd0] sm:$0xff]   ;;  %v1488_v35 = vld [vmem:[%s1902_s1 + $0xd8] sm:$0x1f]   ;;  %s1235_s5 = sshll.u32 %s1910_s7, 2 }
  0x10   : > { %1418 = vmatpush1.bf16.msra.mxu1 %v1630_v8  ;;  %s1690_s10 = scalar_lea.vmem %s1901_s0, %s1323_s27  ;;  %v742_v38 = vand.u32 %v1488_v35, %v740_v36  ;;  %v1820_v35 = vld [vmem:[%s1903_s2] ss:$0 sm:$0xff]  ;;  %s1830_s9 = scalar_lea.vmem %s1904_s3, %s1235_s5 }
  0x11   : > { %1345 = vmatpush3.bf16.msra.mxu0 %v1463_v9  ;;  %1407 = vmatprep.subr.bf16.mxu1 %v1555_v1  ;;  %v1481_v23 = vld [vmem:[%s1690_s10 + $0x4] ss:$16 sps:$4 sm:$0xff]   ;;  %v1479_v26 = vld [vmem:[%s1690_s10] ss:$16 sps:$4 sm:$0xff]   ;;  %v1491_v28 = vld [vmem:[%s1690_s10 + $0x2c] ss:$16 sps:$4 sm:$0xff]  }
  0x12   : > { %1346 = vmatprep.subr.bf16.mxu0 %v1464_v10  ;;  %776 = vmatprep.mubr.bf16.mxu0 %v1481_v23  ;;  %v1484_v29 = vld [vmem:[%s1690_s10 + $0x24] ss:$16 sps:$4 sm:$0xff]   ;;  %v1486_v33 = vld [vmem:[%s1690_s10 + $0x20] ss:$16 sps:$4 sm:$0xff]   ;;  %v1489_v39 = vld [vmem:[%s1690_s10 + $0x28] ss:$16 sps:$4 sm:$0xff]  }
  0x13   : > { %1297 = vmatprep.mubr.msk.bf16.mxu1 %vm712_vm0, %v1491_v28  ;;  %v1492_v37 = vld [vmem:[%s1690_s10 + $0x44] ss:$16 sps:$4 sm:$0xff]   ;;  %v1494_v40 = vld [vmem:[%s1690_s10 + $0x40] ss:$16 sps:$4 sm:$0xff]   ;;  %v1495_v41 = vld [vmem:[%s1690_s10 + $0x4c] ss:$16 sps:$4 sm:$0xff]  }
  0x14   : > { %1419 = vmatpush1.bf16.msra.mxu1 %v1644_v11  ;;  %v1497_v42 = vld [vmem:[%s1690_s10 + $0x64] ss:$16 sps:$4 sm:$0xff]   ;;  %v1499_v43 = vld [vmem:[%s1690_s10 + $0x48] ss:$16 sps:$4 sm:$0xff]   ;;  %v1500_v44 = vld [vmem:[%s1690_s10 + $0x60] ss:$16 sps:$4 sm:$0xff]  }
  0x15   : > { %1347 = vmatpush3.bf16.msra.mxu0 %v1466_v12  ;;  %1408 = vmatprep.subr.bf16.mxu1 %v1555_v1  ;;  %v1501_v45 = vld [vmem:[%s1690_s10 + $0x6c] ss:$16 sps:$4 sm:$0xff]   ;;  %v1503_v46 = vld [vmem:[%s1690_s10 + $0x84] ss:$16 sps:$4 sm:$0xff]   ;;  %v1505_v47 = vld [vmem:[%s1690_s10 + $0x68] ss:$16 sps:$4 sm:$0xff]  }
  0x16   : > { %1348 = vmatprep.subr.bf16.mxu0 %v1467_v13  ;;  %v1506_v48 = vld [vmem:[%s1690_s10 + $0x80] ss:$16 sps:$4 sm:$0xff]   ;;  %v1507_v49 = vld [vmem:[%s1690_s10 + $0x8c] ss:$16 sps:$4 sm:$0xff]   ;;  %v1509_v50 = vld [vmem:[%s1690_s10 + $0xa4] ss:$16 sps:$4 sm:$0xff]  }
  0x17   : > { %v1511_v51 = vld [vmem:[%s1690_s10 + $0x88] ss:$16 sps:$4 sm:$0xff]   ;;  %v1512_v52 = vld [vmem:[%s1690_s10 + $0xa0] ss:$16 sps:$4 sm:$0xff]   ;;  %v1513_v53 = vld [vmem:[%s1690_s10 + $0xac] ss:$16 sps:$4 sm:$0xff]  }
  0x18   : > { %1420 = vmatpush1.bf16.msra.mxu1 %v1657_v14  ;;  %v1515_v54 = vld [vmem:[%s1690_s10 + $0xc4] ss:$16 sps:$4 sm:$0xff]   ;;  %v1517_v55 = vld [vmem:[%s1690_s10 + $0xa8] ss:$16 sps:$4 sm:$0xff]   ;;  %v1518_v56 = vld [vmem:[%s1690_s10 + $0xc0] ss:$16 sps:$4 sm:$0xff]  }
  0x19   : > { %1349 = vmatpush3.bf16.msra.mxu0 %v1469_v15  ;;  %1409 = vmatprep.subr.bf16.mxu1 %v1555_v1  ;;  %v1519_v57 = vld [vmem:[%s1690_s10 + $0xcc] ss:$16 sps:$4 sm:$0xff]   ;;  %v1521_v58 = vld [vmem:[%s1690_s10 + $0xe4] ss:$16 sps:$4 sm:$0xff]   ;;  %v1523_v59 = vld [vmem:[%s1690_s10 + $0xc8] ss:$16 sps:$4 sm:$0xff]  }
  0x1a   : > { %1350 = vmatprep.subr.bf16.mxu0 %v1470_v16  ;;  %v1524_v60 = vld [vmem:[%s1690_s10 + $0xe0] ss:$16 sps:$4 sm:$0xff]   ;;  %v1525_v61 = vld [vmem:[%s1690_s10 + $0xec] ss:$16 sps:$4 sm:$0xff]   ;;  %v1530_v63 = vld [vmem:[%s1690_s10 + $0xe8] ss:$16 sps:$4 sm:$0xff]  }
  0x1b   : > { %v1529_v62 = vld [vmem:[%s1690_s10 + $0xc] ss:$16 sps:$4 sm:$0xff]   ;;  %v1527_v0 = vld [vmem:[%s1690_s10 + $0x8] ss:$16 sps:$4 sm:$0xff]  }
  0x1c   : > { %1421 = vmatpush1.bf16.msra.mxu1 %v1672_v17 }
  0x1d   : > { %1351 = vmatpush3.bf16.msra.mxu0 %v1472_v18  ;;  %1410 = vmatprep.subr.bf16.mxu1 %v1555_v1 }
  0x1e   : > { %1352 = vmatprep.subr.bf16.mxu0 %v1473_v19 }
  0x20   : > { %1422 = vmatpush1.bf16.msra.mxu1 %v1685_v20 }
  0x21   : > { %1353 = vmatpush3.bf16.msra.mxu0 %v1475_v21  ;;  %1411 = vmatprep.subr.bf16.mxu1 %v1555_v1 }
  0x22   : > { %1354 = vmatprep.subr.bf16.mxu0 %v1476_v22 }
  0x24   : > { %1423 = vmatpush1.bf16.msra.mxu1 %v1705_v24 }
  0x25   : > { %1355 = vmatpush3.bf16.msra.mxu0 %v1478_v25  ;;  %1412 = vmatprep.subr.bf16.mxu1 %v1555_v1 }
  0x26   : > { %841 = vmatprep.subr.bf16.mxu0 %v1555_v1 }
  0x28   : > { %777 = vmatmul.mubr.bf16.vlgmr.msra.gmra.mrb[0].mxu0 %v1479_v26  ;;  %1424 = vmatpush1.bf16.msra.mxu1 %v1716_v27 }
  0x29   : > { %842 = vmatpush1.bf16.msra.mxu0 %v1605_v2  ;;  %1413 = vmatprep.subr.bf16.mxu1 %v1555_v1 }
  0x2a   : > { %843 = vmatprep.subr.bf16.mxu0 %v1555_v1  ;;  %784 = vmatprep.mubr.bf16.mxu0 %v1484_v29 }
  0x2c   : > { %1425 = vmatpush1.bf16.msra.mxu1 %v1727_v30 }
  0x2d   : > { %844 = vmatpush1.bf16.msra.mxu0 %v1618_v5  ;;  %1414 = vmatprep.subr.bf16.mxu1 %v1555_v1 }
  0x2e   : > { %845 = vmatprep.subr.bf16.mxu0 %v1555_v1 }
  0x30   : > { %785 = vmatmul.mubr.bf16.gmra.mrb[4].mxu0 %v1486_v33  ;;  %1426 = vmatpush1.bf16.msra.mxu1 %v1487_v34 }
  0x31   : > { %1415 = vmatprep.subr.bf16.mxu1 %v1555_v1  ;;  %846 = vmatpush1.bf16.msra.mxu0 %v1630_v8 }
  0x32   : > { %792 = vmatprep.mubr.bf16.mxu0 %v1492_v37  ;;  %847 = vmatprep.subr.bf16.mxu0 %v1555_v1 }
  0x34   : > { %1427 = vmatpush1.bf16.msra.mxu1 %v742_v38 }
  0x35   : > { %848 = vmatpush1.bf16.msra.mxu0 %v1644_v11 }
  0x36   : > { %849 = vmatprep.subr.bf16.mxu0 %v1555_v1 }
  0x37   : > { %882 = vmatmul.mubr.bf16.vlgmr.msra.gmra.mrb[0].mxu1 %v1489_v39 }
  0x38   : > { %793 = vmatmul.mubr.bf16.gmra.mrb[8].mxu0 %v1494_v40  ;;  %1298 = vmatprep.mubr.msk.bf16.mxu1 %vm712_vm0, %v1495_v41 }
  0x39   : > { %800 = vmatprep.mubr.bf16.mxu0 %v1497_v42  ;;  %850 = vmatpush1.bf16.msra.mxu0 %v1657_v14 }
  0x3a   : > { %851 = vmatprep.subr.bf16.mxu0 %v1555_v1 }
  0x3d   : > { %852 = vmatpush1.bf16.msra.mxu0 %v1672_v17 }
  0x3e   : > { %853 = vmatprep.subr.bf16.mxu0 %v1555_v1 }
  0x3f   : > { %890 = vmatmul.mubr.bf16.gmra.mrb[4].mxu1 %v1499_v43 }
  0x40   : > { %801 = vmatmul.mubr.bf16.gmra.mrb[12].mxu0 %v1500_v44  ;;  %1299 = vmatprep.mubr.msk.bf16.mxu1 %vm712_vm0, %v1501_v45 }
  0x41   : > { %808 = vmatprep.mubr.bf16.mxu0 %v1503_v46  ;;  %854 = vmatpush1.bf16.msra.mxu0 %v1685_v20 }
  0x42   : > { %855 = vmatprep.subr.bf16.mxu0 %v1555_v1 }
  0x45   : > { %856 = vmatpush1.bf16.msra.mxu0 %v1705_v24 }
  0x46   : > { %857 = vmatprep.subr.bf16.mxu0 %v1555_v1 }
  0x47   : > { %898 = vmatmul.mubr.bf16.gmra.mrb[8].mxu1 %v1505_v47 }
  0x48   : > { %809 = vmatmul.mubr.bf16.gmra.mrb[16].mxu0 %v1506_v48  ;;  %1300 = vmatprep.mubr.msk.bf16.mxu1 %vm712_vm0, %v1507_v49 }
  0x49   : > { %816 = vmatprep.mubr.bf16.mxu0 %v1509_v50  ;;  %858 = vmatpush1.bf16.msra.mxu0 %v1716_v27 }
  0x4a   : > { %859 = vmatprep.subr.bf16.mxu0 %v1555_v1 }
  0x4d   : > { %860 = vmatpush1.bf16.msra.mxu0 %v1727_v30 }
  0x4e   : > { %861 = vmatprep.subr.bf16.mxu0 %v1555_v1 }
  0x4f   : > { %906 = vmatmul.mubr.bf16.gmra.mrb[12].mxu1 %v1511_v51 }
  0x50   : > { %817 = vmatmul.mubr.bf16.gmra.mrb[20].mxu0 %v1512_v52  ;;  %1301 = vmatprep.mubr.msk.bf16.mxu1 %vm712_vm0, %v1513_v53 }
  0x51   : > { %824 = vmatprep.mubr.bf16.mxu0 %v1515_v54  ;;  %862 = vmatpush1.bf16.msra.mxu0 %v1487_v34 }
  0x52   : > { %863 = vmatprep.subr.bf16.mxu0 %v1555_v1  ;;  %v1557_v1 = vmov 0.0  }
  0x53   : > { %275 = vst.msk [vmem:[#allocation2 + $0x10] sm:$0xff] %vm272_vm3, %v1557_v1  ;;  %273 = vst.msk [vmem:[#allocation2] sm:$0xff] %vm272_vm3, %v1557_v1 }
  0x54   : > { %274 = vst.msk [vmem:[#allocation2 + $0x8] sm:$0xff] %vm272_vm3, %v1557_v1  ;;  %276 = vst.msk [vmem:[#allocation2 + $0x18] sm:$0xff] %vm272_vm3, %v1557_v1 }
  0x55   : > { %864 = vmatpush1.bf16.msra.mxu0 %v742_v38  ;;  %277 = vst.msk [vmem:[#allocation2 + $0x20] sm:$0xff] %vm272_vm3, %v1557_v1  ;;  %278 = vst.msk [vmem:[#allocation2 + $0x28] sm:$0xff] %vm272_vm3, %v1557_v1 }
  0x56   : > { %279 = vst.msk [vmem:[#allocation2 + $0x30] sm:$0xff] %vm272_vm3, %v1557_v1  ;;  %280 = vst.msk [vmem:[#allocation2 + $0x38] sm:$0xff] %vm272_vm3, %v1557_v1 }
  0x57   : > { %914 = vmatmul.mubr.bf16.gmra.mrb[16].mxu1 %v1517_v55  ;;  %281 = vst.msk [vmem:[#allocation2 + $0x40] sm:$0xff] %vm272_vm3, %v1557_v1  ;;  %282 = vst.msk [vmem:[#allocation2 + $0x48] sm:$0xff] %vm272_vm3, %v1557_v1 }
  0x58   : > { %825 = vmatmul.mubr.bf16.gmra.mrb[24].mxu0 %v1518_v56  ;;  %1302 = vmatprep.mubr.msk.bf16.mxu1 %vm712_vm0, %v1519_v57  ;;  %283 = vst.msk [vmem:[#allocation2 + $0x50] sm:$0xff] %vm272_vm3, %v1557_v1  ;;  %284 = vst.msk [vmem:[#allocation2 + $0x58] sm:$0xff] %vm272_vm3, %v1557_v1 }
  0x59   : > { %832 = vmatprep.mubr.bf16.mxu0 %v1521_v58  ;;  %285 = vst.msk [vmem:[#allocation2 + $0x60] sm:$0xff] %vm272_vm3, %v1557_v1  ;;  %286 = vst.msk [vmem:[#allocation2 + $0x68] sm:$0xff] %vm272_vm3, %v1557_v1 }
  0x5a   : > { %287 = vst.msk [vmem:[#allocation2 + $0x70] sm:$0xff] %vm272_vm3, %v1557_v1  ;;  %288 = vst.msk [vmem:[#allocation2 + $0x78] sm:$0xff] %vm272_vm3, %v1557_v1  ;;  %v291_v14 = vld [vmem:[#allocation2 + $0x10] sm:$0xff] }
  0x5b   : > { %v292_v20 = vld [vmem:[#allocation2 + $0x18] sm:$0xff] }
  0x5c   : > { %v293_v30 = vld [vmem:[#allocation2 + $0x20] sm:$0xff]  ;;  %v294_v37 = vld [vmem:[#allocation2 + $0x28] sm:$0xff] }
  0x5d   : > { %v295_v52 = vld [vmem:[#allocation2 + $0x30] sm:$0xff] }
  0x5f   : > { %922 = vmatmul.mubr.bf16.gmra.mrb[20].mxu1 %v1523_v59 }
  0x60   : > { %833 = vmatmul.mubr.bf16.gmra.mrb[28].mxu0 %v1524_v60  ;;  %1303 = vmatprep.mubr.msk.bf16.mxu1 %vm712_vm0, %v1525_v61  ;;  %v296_v60 = vld [vmem:[#allocation2 + $0x38] sm:$0xff] }
  0x61   : > { %1296 = vmatprep.mubr.msk.bf16.mxu0 %vm712_vm0, %v1529_v62 }
  0x67   : > { %930 = vmatmul.mubr.bf16.gmra.mrb[24].mxu1 %v1530_v63 }
  0x68   : > { %874 = vmatmul.mubr.bf16.vlgmr.msra.gmra.mrb[32].mxu0 %v1527_v0 }
  0xfb   : > { %v1356_v2 = vpop.f32.mrb[0].mxu0 }
  0xfc   : > { %v1357_v3 = vpop.f32.mrb[1].mxu0 }
  0xfd   : > { %v1811_v4 = vadd.f32 %v1357_v3, %v1356_v2  ;;  %v1359_v5 = vpop.f32.mrb[2].mxu0 }
  0xfe   : > { %v1360_v6 = vpop.f32.mrb[3].mxu0 }
  0xff   : > { %v1813_v7 = vadd.f32 %v1360_v6, %v1359_v5 }
 0x103   : > { %v1362_v8 = vpop.f32.mrb[4].mxu0 }
 0x104   : > { %v1363_v9 = vpop.f32.mrb[5].mxu0 }
 0x105   : > { %v1364_v10 = vadd.f32 %v1363_v9, %v1362_v8  ;;  %v1365_v11 = vpop.f32.mrb[6].mxu0 }
 0x106   : > { %v1366_v12 = vpop.f32.mrb[7].mxu0 }
 0x107   : > { %v1367_v13 = vadd.f32 %v1366_v12, %v1365_v11 }
 0x10a   : > { %v883_v15 = vpop.f32.mrb[0].mxu1 }
 0x10b   : > { %v884_v16 = vadd.f32 %v1364_v10, %v883_v15  ;;  %v1368_v17 = vpop.f32.mrb[8].mxu0  ;;  %v885_v18 = vpop.f32.mrb[1].mxu1 }
 0x10c   : > { %v1369_v19 = vpop.f32.mrb[9].mxu0  ;;  %v886_v21 = vpop.f32.mrb[2].mxu1 }
 0x10d   : > { %v940_v22 = vadd.f32 %v884_v16, %v291_v14  ;;  %v1370_v23 = vadd.f32 %v1369_v19, %v1368_v17  ;;  %v887_v24 = vadd.f32 %v1367_v13, %v886_v21  ;;  %v1371_v25 = vpop.f32.mrb[10].mxu0  ;;  %v888_v26 = vpop.f32.mrb[3].mxu1  ;;  %v297_v14 = vld [vmem:[#allocation2 + $0x40] sm:$0xff] }
 0x10e   : > { %v1372_v27 = vpop.f32.mrb[11].mxu0 }
 0x10f   : > { %957 = vst.msk [vmem:[#allocation2 + $0x10] sm:$0xff] %vm272_vm3, %v940_v22  ;;  %v941_v28 = vadd.f32 %v887_v24, %v292_v20  ;;  %v1373_v29 = vadd.f32 %v1372_v27, %v1371_v25  ;;  %v298_v22 = vld [vmem:[#allocation2 + $0x48] sm:$0xff] }
 0x111   : > { %958 = vst.msk [vmem:[#allocation2 + $0x18] sm:$0xff] %vm272_vm3, %v941_v28 }
 0x112   : > { %v891_v31 = vpop.f32.mrb[4].mxu1 }
 0x113   : > { %v892_v32 = vadd.f32 %v1370_v23, %v891_v31  ;;  %v1374_v33 = vpop.f32.mrb[12].mxu0  ;;  %v893_v34 = vpop.f32.mrb[5].mxu1 }
 0x114   : > { %v1375_v36 = vpop.f32.mrb[13].mxu0  ;;  %v894_v38 = vpop.f32.mrb[6].mxu1 }
 0x115   : > { %v942_v39 = vadd.f32 %v892_v32, %v293_v30  ;;  %v1376_v40 = vadd.f32 %v1375_v36, %v1374_v33  ;;  %v895_v41 = vadd.f32 %v1373_v29, %v894_v38  ;;  %v1377_v42 = vpop.f32.mrb[14].mxu0  ;;  %v896_v43 = vpop.f32.mrb[7].mxu1 }
 0x116   : > { %v976_v44 = vld [vmem:[#allocation2 + $0x10] sm:$0xff]  ;;  %v1378_v45 = vpop.f32.mrb[15].mxu0 }
 0x117   : > { %v999_v46 = vadd.f32 %v1820_v35, %v976_v44  ;;  %959 = vst.msk [vmem:[#allocation2 + $0x20] sm:$0xff] %vm272_vm3, %v942_v39  ;;  %v943_v47 = vadd.f32 %v895_v41, %v294_v37  ;;  %v1379_v48 = vadd.f32 %v1378_v45, %v1377_v42  ;;  %v299_v39 = vld [vmem:[#allocation2 + $0x50] sm:$0xff] }
 0x118   : > { %v977_v49 = vld [vmem:[#allocation2 + $0x18] sm:$0xff] }
 0x119   : > { %v1015_v50 = vmax.f32 %v999_v46, 0.0  ;;  %v1000_v51 = vadd.f32 %v1820_v35, %v977_v49  ;;  %960 = vst.msk [vmem:[#allocation2 + $0x28] sm:$0xff] %vm272_vm3, %v943_v47  ;;  %v300_v47 = vld [vmem:[#allocation2 + $0x58] sm:$0xff] }
 0x11a   : > { %v899_v53 = vpop.f32.mrb[8].mxu1 }
 0x11b   : > { %v1326_v54 = vpack.c.bf16 %v1015_v50, %v1015_v50  ;;  %v1016_v55 = vmax.f32 %v1000_v51, 0.0  ;;  %v900_v56 = vadd.f32 %v1376_v40, %v899_v53  ;;  %v1380_v57 = vpop.f32.mrb[16].mxu0  ;;  %v901_v58 = vpop.f32.mrb[9].mxu1 }
 0x11c   : > { %v1381_v59 = vpop.f32.mrb[17].mxu0  ;;  %v902_v61 = vpop.f32.mrb[10].mxu1 }
 0x11d   : > { %1096 = vst.msk [vmem:[%s1830_s9 + $0x8] sm:$0xf] %vm1093_vm4, %v1326_v54  ;;  %v1327_v62 = vpack.c.bf16 %v1016_v55, %v1016_v55  ;;  %v944_v63 = vadd.f32 %v900_v56, %v295_v52  ;;  %v1382_v0 = vadd.f32 %v1381_v59, %v1380_v57  ;;  %v903_v1 = vadd.f32 %v1379_v48, %v902_v61  ;;  %v1383_v2 = vpop.f32.mrb[18].mxu0  ;;  %v904_v3 = vpop.f32.mrb[11].mxu1 }
 0x11e   : > { %v978_v5 = vld [vmem:[#allocation2 + $0x20] sm:$0xff]  ;;  %v1384_v6 = vpop.f32.mrb[19].mxu0 }
 0x11f   : > { %1097 = vst.msk [vmem:[%s1830_s9 + $0xc] sm:$0xf] %vm1093_vm4, %v1327_v62  ;;  %v1001_v8 = vadd.f32 %v1820_v35, %v978_v5  ;;  %v945_v9 = vadd.f32 %v903_v1, %v296_v60  ;;  %v1385_v10 = vadd.f32 %v1384_v6, %v1383_v2 }
 0x120   : > { %961 = vst.msk [vmem:[#allocation2 + $0x30] sm:$0xff] %vm272_vm3, %v944_v63  ;;  %v979_v11 = vld [vmem:[#allocation2 + $0x28] sm:$0xff]  ;;  %v301_v63 = vld [vmem:[#allocation2 + $0x60] sm:$0xff] }
 0x121   : > { %v1017_v12 = vmax.f32 %v1001_v8, 0.0  ;;  %v1002_v13 = vadd.f32 %v1820_v35, %v979_v11  ;;  %962 = vst.msk [vmem:[#allocation2 + $0x38] sm:$0xff] %vm272_vm3, %v945_v9  ;;  %v302_v9 = vld [vmem:[#allocation2 + $0x68] sm:$0xff] }
 0x122   : > { %v907_v15 = vpop.f32.mrb[12].mxu1 }
 0x123   : > { %v1328_v16 = vpack.c.bf16 %v1017_v12, %v1017_v12  ;;  %v1018_v17 = vmax.f32 %v1002_v13, 0.0  ;;  %v908_v18 = vadd.f32 %v1382_v0, %v907_v15  ;;  %v1386_v19 = vpop.f32.mrb[20].mxu0  ;;  %v909_v20 = vpop.f32.mrb[13].mxu1 }
 0x124   : > { %v1387_v21 = vpop.f32.mrb[21].mxu0  ;;  %v910_v23 = vpop.f32.mrb[14].mxu1 }
 0x125   : > { %1098 = vst.msk [vmem:[%s1830_s9 + $0x10] sm:$0xf] %vm1093_vm4, %v1328_v16  ;;  %v1329_v24 = vpack.c.bf16 %v1018_v17, %v1018_v17  ;;  %v946_v25 = vadd.f32 %v908_v18, %v297_v14  ;;  %v1388_v26 = vadd.f32 %v1387_v21, %v1386_v19  ;;  %v911_v27 = vadd.f32 %v1385_v10, %v910_v23  ;;  %v1389_v28 = vpop.f32.mrb[22].mxu0  ;;  %v912_v29 = vpop.f32.mrb[15].mxu1 }
 0x126   : > { %v1390_v31 = vpop.f32.mrb[23].mxu0 }
 0x127   : > { %v980_v30 = vld [vmem:[#allocation2 + $0x30] sm:$0xff]  ;;  %1099 = vst.msk [vmem:[%s1830_s9 + $0x14] sm:$0xf] %vm1093_vm4, %v1329_v24  ;;  %v947_v33 = vadd.f32 %v911_v27, %v298_v22  ;;  %v1391_v34 = vadd.f32 %v1390_v31, %v1389_v28 }
 0x128   : > { %v1003_v32 = vadd.f32 %v1820_v35, %v980_v30  ;;  %963 = vst.msk [vmem:[#allocation2 + $0x40] sm:$0xff] %vm272_vm3, %v946_v25  ;;  %v981_v36 = vld [vmem:[#allocation2 + $0x38] sm:$0xff]  ;;  %v303_v25 = vld [vmem:[#allocation2 + $0x70] sm:$0xff]  ;;  %v289_v30 = vld [vmem:[#allocation2] sm:$0xff] }
 0x129   : > { %v1004_v38 = vadd.f32 %v1820_v35, %v981_v36  ;;  %964 = vst.msk [vmem:[#allocation2 + $0x48] sm:$0xff] %vm272_vm3, %v947_v33  ;;  %v304_v36 = vld [vmem:[#allocation2 + $0x78] sm:$0xff] }
 0x12a   : > { %v1019_v37 = vmax.f32 %v1003_v32, 0.0  ;;  %v915_v40 = vpop.f32.mrb[16].mxu1 }
 0x12b   : > { %v1020_v42 = vmax.f32 %v1004_v38, 0.0  ;;  %v916_v43 = vadd.f32 %v1388_v26, %v915_v40  ;;  %v1392_v44 = vpop.f32.mrb[24].mxu0  ;;  %v917_v45 = vpop.f32.mrb[17].mxu1 }
 0x12c   : > { %v1330_v41 = vpack.c.bf16 %v1019_v37, %v1019_v37  ;;  %v1393_v46 = vpop.f32.mrb[25].mxu0  ;;  %v918_v48 = vpop.f32.mrb[18].mxu1 }
 0x12d   : > { %v1331_v49 = vpack.c.bf16 %v1020_v42, %v1020_v42  ;;  %v948_v50 = vadd.f32 %v916_v43, %v299_v39  ;;  %v1394_v51 = vadd.f32 %v1393_v46, %v1392_v44  ;;  %v919_v52 = vadd.f32 %v1391_v34, %v918_v48  ;;  %v1395_v53 = vpop.f32.mrb[26].mxu0  ;;  %v920_v54 = vpop.f32.mrb[19].mxu1 }
 0x12e   : > { %1100 = vst.msk [vmem:[%s1830_s9 + $0x18] sm:$0xf] %vm1093_vm4, %v1330_v41  ;;  %v1396_v56 = vpop.f32.mrb[27].mxu0  ;;  %v290_v41 = vld [vmem:[#allocation2 + $0x8] sm:$0xff] }
 0x12f   : > { %v982_v55 = vld [vmem:[#allocation2 + $0x40] sm:$0xff]  ;;  %1101 = vst.msk [vmem:[%s1830_s9 + $0x1c] sm:$0xf] %vm1093_vm4, %v1331_v49  ;;  %v949_v58 = vadd.f32 %v919_v52, %v300_v47  ;;  %v1397_v59 = vadd.f32 %v1396_v56, %v1395_v53 }
 0x130   : > { %v1005_v57 = vadd.f32 %v1820_v35, %v982_v55  ;;  %965 = vst.msk [vmem:[#allocation2 + $0x50] sm:$0xff] %vm272_vm3, %v948_v50  ;;  %v983_v60 = vld [vmem:[#allocation2 + $0x48] sm:$0xff] }
 0x131   : > { %v1006_v62 = vadd.f32 %v1820_v35, %v983_v60  ;;  %966 = vst.msk [vmem:[#allocation2 + $0x58] sm:$0xff] %vm272_vm3, %v949_v58 }
 0x132   : > { %v1021_v61 = vmax.f32 %v1005_v57, 0.0  ;;  %v923_v0 = vpop.f32.mrb[20].mxu1 }
 0x133   : > { %v1022_v2 = vmax.f32 %v1006_v62, 0.0  ;;  %v924_v3 = vadd.f32 %v1394_v51, %v923_v0  ;;  %v1398_v5 = vpop.f32.mrb[28].mxu0  ;;  %v925_v6 = vpop.f32.mrb[21].mxu1 }
 0x134   : > { %v1332_v1 = vpack.c.bf16 %v1021_v61, %v1021_v61  ;;  %v1399_v8 = vpop.f32.mrb[29].mxu0  ;;  %v926_v10 = vpop.f32.mrb[22].mxu1 }
 0x135   : > { %v1333_v11 = vpack.c.bf16 %v1022_v2, %v1022_v2  ;;  %v950_v12 = vadd.f32 %v924_v3, %v301_v63  ;;  %v1400_v13 = vadd.f32 %v1399_v8, %v1398_v5  ;;  %v927_v14 = vadd.f32 %v1397_v59, %v926_v10  ;;  %v1401_v15 = vpop.f32.mrb[30].mxu0  ;;  %v928_v16 = vpop.f32.mrb[23].mxu1 }
 0x136   : > { %1102 = vst.msk [vmem:[%s1830_s9 + $0x20] sm:$0xf] %vm1093_vm4, %v1332_v1  ;;  %v1402_v18 = vpop.f32.mrb[31].mxu0 }
 0x137   : > { %v984_v17 = vld [vmem:[#allocation2 + $0x50] sm:$0xff]  ;;  %1103 = vst.msk [vmem:[%s1830_s9 + $0x24] sm:$0xf] %vm1093_vm4, %v1333_v11  ;;  %v951_v20 = vadd.f32 %v927_v14, %v302_v9  ;;  %v1403_v21 = vadd.f32 %v1402_v18, %v1401_v15 }
 0x138   : > { %v1007_v19 = vadd.f32 %v1820_v35, %v984_v17  ;;  %967 = vst.msk [vmem:[#allocation2 + $0x60] sm:$0xff] %vm272_vm3, %v950_v12  ;;  %v985_v22 = vld [vmem:[#allocation2 + $0x58] sm:$0xff] }
 0x139   : > { %v1008_v24 = vadd.f32 %v1820_v35, %v985_v22  ;;  %968 = vst.msk [vmem:[#allocation2 + $0x68] sm:$0xff] %vm272_vm3, %v951_v20 }
 0x13a   : > { %v1023_v23 = vmax.f32 %v1007_v19, 0.0  ;;  %v931_v26 = vpop.f32.mrb[24].mxu1 }
 0x13b   : > { %v1024_v28 = vmax.f32 %v1008_v24, 0.0  ;;  %v932_v29 = vadd.f32 %v1400_v13, %v931_v26  ;;  %v875_v31 = vpop.f32.mrb[32].mxu0  ;;  %v933_v32 = vpop.f32.mrb[25].mxu1 }
 0x13c   : > { %v1334_v27 = vpack.c.bf16 %v1023_v23, %v1023_v23  ;;  %v876_v33 = vadd.f32 %v1811_v4, %v875_v31  ;;  %v877_v34 = vpop.f32.mrb[33].mxu0  ;;  %v934_v37 = vpop.f32.mrb[26].mxu1 }
 0x13d   : > { %v1335_v38 = vpack.c.bf16 %v1024_v28, %v1024_v28  ;;  %v952_v39 = vadd.f32 %v932_v29, %v303_v25  ;;  %v935_v40 = vadd.f32 %v1403_v21, %v934_v37  ;;  %v878_v42 = vpop.f32.mrb[34].mxu0  ;;  %v936_v43 = vpop.f32.mrb[27].mxu1 }
 0x13e   : > { %1104 = vst.msk [vmem:[%s1830_s9 + $0x28] sm:$0xf] %vm1093_vm4, %v1334_v27  ;;  %v938_v45 = vadd.f32 %v876_v33, %v289_v30  ;;  %v879_v46 = vadd.f32 %v1813_v7, %v878_v42  ;;  %v880_v47 = vpop.f32.mrb[35].mxu0 }
 0x13f   : > { %v986_v44 = vld [vmem:[#allocation2 + $0x60] sm:$0xff]  ;;  %1105 = vst.msk [vmem:[%s1830_s9 + $0x2c] sm:$0xf] %vm1093_vm4, %v1335_v38  ;;  %v953_v48 = vadd.f32 %v935_v40, %v304_v36 }
 0x140   : > { %v1009_v4 = vadd.f32 %v1820_v35, %v986_v44  ;;  %969 = vst.msk [vmem:[#allocation2 + $0x70] sm:$0xff] %vm272_vm3, %v952_v39  ;;  %v987_v49 = vld [vmem:[#allocation2 + $0x68] sm:$0xff]  ;;  %955 = vst.msk [vmem:[#allocation2] sm:$0xff] %vm272_vm3, %v938_v45  ;;  %v939_v50 = vadd.f32 %v879_v46, %v290_v41 }
 0x141   : > { %v1010_v52 = vadd.f32 %v1820_v35, %v987_v49  ;;  %970 = vst.msk [vmem:[#allocation2 + $0x78] sm:$0xff] %vm272_vm3, %v953_v48 }
 0x142   : > { %v1025_v51 = vmax.f32 %v1009_v4, 0.0  ;;  %956 = vst.msk [vmem:[#allocation2 + $0x8] sm:$0xff] %vm272_vm3, %v939_v50 }
 0x143   : > { %v1026_v53 = vmax.f32 %v1010_v52, 0.0 }
 0x144   : > { %v1336_v7 = vpack.c.bf16 %v1025_v51, %v1025_v51 }
 0x145   : > { %v1337_v54 = vpack.c.bf16 %v1026_v53, %v1026_v53 }
 0x146   : > { %1106 = vst.msk [vmem:[%s1830_s9 + $0x30] sm:$0xf] %vm1093_vm4, %v1336_v7 }
 0x147   : > { %v988_v55 = vld [vmem:[#allocation2 + $0x70] sm:$0xff]  ;;  %1107 = vst.msk [vmem:[%s1830_s9 + $0x34] sm:$0xf] %vm1093_vm4, %v1337_v54  ;;  %v974_v57 = vld [vmem:[#allocation2] sm:$0xff] }
 0x148   : > { %v1011_v56 = vadd.f32 %v1820_v35, %v988_v55  ;;  %v997_v58 = vadd.f32 %v1820_v35, %v974_v57  ;;  %v989_v59 = vld [vmem:[#allocation2 + $0x78] sm:$0xff] }
 0x149   : > { %v1012_v61 = vadd.f32 %v1820_v35, %v989_v59  ;;  %v975_v62 = vld [vmem:[#allocation2 + $0x8] sm:$0xff] }
 0x14a   : > { %v1027_v60 = vmax.f32 %v1011_v56, 0.0  ;;  %v1013_v63 = vmax.f32 %v997_v58, 0.0  ;;  %v998_v0 = vadd.f32 %v1820_v35, %v975_v62 }
 0x14b   : > { %v1028_v2 = vmax.f32 %v1012_v61, 0.0 }
 0x14c   : > { %v1338_v1 = vpack.c.bf16 %v1027_v60, %v1027_v60  ;;  %v1324_v3 = vpack.c.bf16 %v1013_v63, %v1013_v63  ;;  %v1014_v5 = vmax.f32 %v998_v0, 0.0 }
 0x14d   : > { %v1339_v6 = vpack.c.bf16 %v1028_v2, %v1028_v2 }
 0x14e   : > { %1108 = vst.msk [vmem:[%s1830_s9 + $0x38] sm:$0xf] %vm1093_vm4, %v1338_v1  ;;  %1094 = vst.msk [vmem:[%s1830_s9] sm:$0xf] %vm1093_vm4, %v1324_v3  ;;  %v1325_v8 = vpack.c.bf16 %v1014_v5, %v1014_v5 }
 0x14f   : > { %1109 = vst.msk [vmem:[%s1830_s9 + $0x3c] sm:$0xf] %vm1093_vm4, %v1339_v6 }
 0x150   : > { %1095 = vst.msk [vmem:[%s1830_s9 + $0x4] sm:$0xf] %vm1093_vm4, %v1325_v8 }
 0x151 PF: > { %s13_s14 = sadd.s32 1, %s1553_s14   ;;  %s1905_s12 = smov %s1549_s13 }
 0x152   : > { %p10_p5 = scmp.ge.s32.totalorder %s13_s14, 34   ;;  %s1906_s13 = smov %s1908_s15 }
 0x154   :  { %12 = sbr.rel (!%p10_p5) target bundleno = 2 (0x2), region = 76 }

</bundles_post_ra>
